<compile_context>
chip_gen: v7x
topology: tpu7x:2x2x1
jax: 0.10.0
libtpu: 0.0.40
codegen_flags: <defaults>
</compile_context>

<pallas_src>
import functools

import jax
import jax.numpy as jnp
from jax.experimental import pallas as pl
from jax.experimental.pallas import tpu as pltpu

MIN_VALUE = -3.0
MAX_VALUE = 0.928


def _conv1x1_clamp_kernel(w_ref, b_ref, x_ref, o_ref, *, padding):
    # w_ref: (Cout, Cin)   b_ref: (Cout, 1)
    # x_ref: (B, Cin, L)   o_ref: (B, Cout, L + 2*padding)
    w = w_ref[...]
    b = b_ref[...]
    B, Cin, L = x_ref.shape

    zpad = jnp.zeros((Cin, padding), dtype=x_ref.dtype)

    # B is tiny and static (spec: B=1): one lane-shift + one MXU pass + one
    # full-row store per batch element.
    for bi in range(B):
        # Lane-shifted zero-padded input (Cin, Lpad); pad columns of the conv
        # output then come out of the matmul as W @ 0 + b = b automatically.
        xp = jnp.concatenate([zpad, x_ref[bi], zpad], axis=-1)
        y = jnp.dot(
            w,
            xp,
            preferred_element_type=jnp.float32,
            precision=jax.lax.Precision.HIGHEST,
        ) + b
        o_ref[bi] = jnp.clip(y, MIN_VALUE, MAX_VALUE).astype(o_ref.dtype)


def conv1d_k1_clamp(x, weight, bias, padding=1):
    """x: (B, Cin, L) f32; weight: (Cout, Cin); bias: (Cout,).

    Returns clamp(conv1d_k1(x, weight, bias, zero-padding=padding)),
    shape (B, Cout, L + 2*padding)."""
    B, Cin, L = x.shape
    Cout = weight.shape[0]
    Lpad = L + 2 * padding

    bias2d = bias.reshape(Cout, 1)

    cost = pl.CostEstimate(
        flops=2 * B * Cout * Cin * Lpad,
        transcendentals=0,
        bytes_accessed=4 * (x.size + weight.size + bias.size + B * Cout * Lpad),
    )

    return pl.pallas_call(
        functools.partial(_conv1x1_clamp_kernel, padding=padding),
        out_shape=jax.ShapeDtypeStruct((B, Cout, Lpad), x.dtype),
        in_specs=[
            pl.BlockSpec(memory_space=pltpu.MemorySpace.VMEM),  # weight (full array)
            pl.BlockSpec(memory_space=pltpu.MemorySpace.VMEM),  # bias   (full array)
            pl.BlockSpec(memory_space=pltpu.MemorySpace.VMEM),  # x      (full array)
        ],
        out_specs=pl.BlockSpec(memory_space=pltpu.MemorySpace.VMEM),
        cost_estimate=cost,
    )(weight, bias2d, x)


if __name__ == "__main__":
    key = jax.random.PRNGKey(0)
    k_x, k_w, k_b = jax.random.split(key, 3)

    # Shapes implied by the PyTorch module: x1 = torch.randn(1, 33, 33),
    # Conv1d(33, 87, kernel_size=1, padding=1).
    B, Cin, L = 1, 33, 33
    Cout = 87
    padding = 1

    x1 = jax.random.normal(k_x, (B, Cin, L), dtype=jnp.float32)
    bound = 1.0 / (Cin ** 0.5)  # PyTorch-like uniform init scale
    weight = jax.random.uniform(k_w, (Cout, Cin), minval=-bound, maxval=bound,
                                dtype=jnp.float32)
    bias = jax.random.uniform(k_b, (Cout,), minval=-bound, maxval=bound,
                              dtype=jnp.float32)

    out = conv1d_k1_clamp(x1, weight, bias, padding=padding)
    out = jax.block_until_ready(out)

    # Reference: 1x1 conv with zero padding == channel matmul on padded input.
    x_pad = jnp.pad(x1, ((0, 0), (0, 0), (padding, padding)))
    ref = jnp.einsum("oc,bcl->bol", weight, x_pad,
                     precision=jax.lax.Precision.HIGHEST) + bias[None, :, None]
    ref = jnp.clip(ref, MIN_VALUE, MAX_VALUE)

    assert out.shape == (B, Cout, L + 2 * padding), out.shape
    assert jnp.allclose(out, ref, atol=1e-5, rtol=1e-5)

    print("KERNEL_OK")
</pallas_src>

<mosaic_0001>
module attributes {stable_mosaic.version = 11 : i64} {
  func.func @_conv1x1_clamp_kernel(%arg0: memref<87x33xf32, #tpu.memory_space<vmem>>, %arg1: memref<87x1xf32, #tpu.memory_space<vmem>>, %arg2: memref<1x33x33xf32, #tpu.memory_space<vmem>>, %arg3: memref<1x87x35xf32, #tpu.memory_space<vmem>>) attributes {dimension_semantics = [], scalar_prefetch = 0 : i64, scratch_operands = 0 : i64, tpu.core_type = #tpu.core_type<tc>} {
    %c0 = arith.constant 0 : index
    %c0_0 = arith.constant 0 : index
    %0 = vector.load %arg0[%c0, %c0_0] : memref<87x33xf32, #tpu.memory_space<vmem>>, vector<87x33xf32>
    %c0_1 = arith.constant 0 : index
    %c0_2 = arith.constant 0 : index
    %1 = vector.load %arg1[%c0_1, %c0_2] : memref<87x1xf32, #tpu.memory_space<vmem>>, vector<87x1xf32>
    %cst = arith.constant 0.000000e+00 : f32
    %2 = vector.broadcast %cst : f32 to vector<33x1xf32>
    %c0_3 = arith.constant 0 : index
    %c0_4 = arith.constant 0 : index
    %c0_5 = arith.constant 0 : index
    %3 = vector.load %arg2[%c0_3, %c0_4, %c0_5] : memref<1x33x33xf32, #tpu.memory_space<vmem>>, vector<1x33x33xf32>
    %4 = vector.shape_cast %3 : vector<1x33x33xf32> to vector<33x33xf32>
    %5 = tpu.concatenate %2, %4, %2 in 1 : vector<33x1xf32>, vector<33x33xf32>, vector<33x1xf32> -> vector<33x35xf32>
    %cst_6 = arith.constant dense<0.000000e+00> : vector<87x35xf32>
    %6 = tpu.matmul %0, %5, %cst_6 {dimension_numbers = #tpu.dot_dimension_numbers<[1], [0], [0], [1], [0, 0, 1, 1], [], []>, precision = #tpu.contract_precision<fp32>} : vector<87x33xf32>, vector<33x35xf32>, vector<87x35xf32> -> vector<87x35xf32>
    %7 = vector.broadcast %1 : vector<87x1xf32> to vector<87x35xf32>
    %8 = arith.addf %6, %7 : vector<87x35xf32>
    %cst_7 = arith.constant -3.000000e+00 : f32
    %cst_8 = arith.constant 0.927999973 : f32
    %9 = vector.broadcast %cst_7 : f32 to vector<87x35xf32>
    %10 = arith.maximumf %9, %8 : vector<87x35xf32>
    %11 = vector.broadcast %cst_8 : f32 to vector<87x35xf32>
    %12 = arith.minimumf %11, %10 : vector<87x35xf32>
    %c0_9 = arith.constant 0 : index
    %c0_10 = arith.constant 0 : index
    %c0_11 = arith.constant 0 : index
    %13 = vector.load %arg3[%c0_9, %c0_10, %c0_11] : memref<1x87x35xf32, #tpu.memory_space<vmem>>, vector<1x87x35xf32>
    %14 = vector.shape_cast %13 : vector<1x87x35xf32> to vector<87x35xf32>
    %15 = vector.shape_cast %12 : vector<87x35xf32> to vector<1x87x35xf32>
    tpu.vector_store %arg3[%c0_9, %c0_10, %c0_11], %15 {strides = array<i32>} : memref<1x87x35xf32, #tpu.memory_space<vmem>>, vector<1x87x35xf32>,
    return
  }
}

</mosaic_0001>

<bundles_post_ra>
// kernel: tpu_custom_call.1
= control target key start
LH: loop header
LB: loop body
LE: loop exit
PB: predicated region body
PF: predicated region fallthrough
CT: control target
= control target key end

     0   :  { %v1640_v2 = vmov 0.0|0.0   ;;  %s1641_s16 = smov 1   ;;  %vm1642_vm0 = vmmov 0   ;;  %v1643_v6 = vmov 0.0   ;;  %vm128_vm1 = vcmask 269312   ;;  %s2126_s2 = inlined_call_operand.vmem [shape: f32[1,33,33], index: 2, kind: input, shape index: {}]   ;;  %s2127_s0 = inlined_call_operand.vmem [shape: f32[87,33], index: 0, kind: input, shape index: {}]   ;;  %s2128_s1 = inlined_call_operand.vmem [shape: f32[87,1], index: 1, kind: input, shape index: {}]   ;;  %s2129_s3 = inlined_call_operand.vmem [shape: f32[1,87,35], index: 3, kind: output, shape index: {}]  }
   0x1   :  { %v38_v0 = vld [vmem:[%s2126_s2 + $0x10] sm:$0xff]  ;;  %v36_v1 = vld [vmem:[%s2126_s2] sm:$0xff]  ;;  %1487 = vmatprep.subr.bf16.mxu1 %v1640_v2  ;;  %1505 = vmatprep.subr.bf16.mxu0 %v1640_v2  ;;  %v39_v3 = vld [vmem:[%s2126_s2 + $0x18] sm:$0xff]  ;;  %vm61_vm2 = vcmask 7168   ;;  %vm67_vm3 = vcmask 277504   ;;  %vm162_vm4 = vcmask 1040384  }
   0x2   :  { %50 = vrot.lane.b32.xlu1 %v38_v0, %s1641_s16  ;;  %46 = vrot.lane.b32.xlu0 %v36_v1, %s1641_s16  ;;  %v37_v4 = vld [vmem:[%s2126_s2 + $0x8] sm:$0xff]  ;;  %v40_v5 = vld [vmem:[%s2126_s2 + $0x20] sm:$0x1]  ;;  %vm1116_vm5 = vcmask 285696   ;;  %vm1127_vm6 = vcmask 284672  }
   0x3   :  { %1239 = vmatprep.mubr.msk.f32.mxu1 %vm1642_vm0, %v1643_v6  ;;  %1368 = vmatprep.mubr.msk.f32.mxu0 %vm1642_vm0, %v1643_v6  ;;  %v14_v7 = vld [vmem:[%s2127_s0] sm:$0xff]  ;;  %v15_v8 = vld [vmem:[%s2127_s0 + $0x8] sm:$0xff]  ;;  %v16_v14 = vld [vmem:[%s2127_s0 + $0x10] sm:$0xff] }
   0x4   :  { %v130_v9 = vsel %vm128_vm1, %v14_v7, 0  ;;  %v133_v10 = vsel %vm128_vm1, %v15_v8, 0  ;;  %v136_v20 = vsel %vm128_vm1, %v16_v14, 0  ;;  %v17_v31 = vld [vmem:[%s2127_s0 + $0x18] sm:$0xff]  ;;  %v18_v43 = vld [vmem:[%s2127_s0 + $0x20] sm:$0xff]  ;;  %v19_v58 = vld [vmem:[%s2127_s0 + $0x28] sm:$0xff] }
   0x5   :  { %v1694_v13 = vand.u32 4294901760, %v130_v9  ;;  %v1702_v18 = vand.u32 4294901760, %v133_v10  ;;  %v1716_v30 = vand.u32 4294901760, %v136_v20  ;;  %v139_v40 = vsel %vm128_vm1, %v17_v31, 0  ;;  %v20_v8 = vld [vmem:[%s2127_s0 + $0x30] sm:$0xff] }
   0x6   :  { %52 = vrot.lane.b32.xlu1 %v39_v3, %s1641_s16  ;;  %48 = vrot.lane.b32.xlu0 %v37_v4, %s1641_s16  ;;  %v1747_v51 = vand.u32 4294901760, %v139_v40  ;;  %v142_v54 = vsel %vm128_vm1, %v18_v43, 0  ;;  %v145_v7 = vsel %vm128_vm1, %v19_v58, 0 }
   0x7   :  { %v1707_v24 = vsub.f32 %v130_v9, %v1694_v13  ;;  %v1714_v29 = vsub.f32 %v133_v10, %v1702_v18  ;;  %v1740_v47 = vsub.f32 %v136_v20, %v1716_v30  ;;  %v1772_v1 = vand.u32 4294901760, %v142_v54 }
   0x8   :  { %v1770_v0 = vsub.f32 %v139_v40, %v1747_v51  ;;  %v22_v40 = vld [vmem:[%s2127_s0 + $0x40] sm:$0xff] }
   0x9   :  { %v238_v37 = vand.u32 4294901760, %v1707_v24  ;;  %v248_v46 = vand.u32 4294901760, %v1714_v29  ;;  %v258_v62 = vand.u32 4294901760, %v1740_v47 }
   0xa   :  { %54 = vrot.lane.b32.xlu0 %v40_v5, %s1641_s16  ;;  %v268_v14 = vand.u32 4294901760, %v1770_v0 }
   0xb   :  { %v239_v50 = vsub.f32 %v1707_v24, %v238_v37  ;;  %v249_v61 = vsub.f32 %v1714_v29, %v248_v46 }
   0xd   :  { %v240_v63 = vand.u32 4294901760, %v239_v50  ;;  %v154_v50 = vsel %vm128_vm1, %v22_v40, 0 }
  0x74   :  { %v51_v11 = vpop.permute.xlu1 %50  ;;  %v47_v12 = vpop.permute.xlu0 %46 }
  0x75   :  { %v64_v15 = vsel %vm61_vm2, 0.0, %v51_v11  ;;  %v62_v16 = vsel %vm61_vm2, 0.0, %v47_v12  ;;  %v250_v11 = vand.u32 4294901760, %v249_v61  ;;  %v259_v12 = vsub.f32 %v1740_v47, %v258_v62  ;;  %v25_v61 = vld [vmem:[%s2128_s1] sm:$0xff] }
  0x76   :  { %v68_v17 = vsel %vm67_vm3, %v62_v16, 0.0  ;;  %v70_v21 = vsel %vm67_vm3, %v64_v15, 0.0  ;;  %v1790_v15 = vsub.f32 %v142_v54, %v1772_v1  ;;  %v1792_v16 = vand.u32 4294901760, %v145_v7 }
  0x77   :  { %v167_v19 = vand.u32 4294901760, %v68_v17  ;;  %v173_v32 = vand.u32 4294901760, %v70_v21 }
  0x78   :  { %v53_v22 = vpop.permute.xlu1 %52  ;;  %v49_v23 = vpop.permute.xlu0 %48 }
  0x79   :  { %v65_v25 = vsel %vm61_vm2, 0.0, %v53_v22  ;;  %v63_v26 = vsel %vm61_vm2, 0.0, %v49_v23  ;;  %v1721_v33 = vsub.f32 %v68_v17, %v167_v19  ;;  %v1735_v44 = vsub.f32 %v70_v21, %v173_v32 }
  0x7a   :  { %v71_v27 = vsel %vm67_vm3, %v65_v25, 0.0  ;;  %v69_v28 = vsel %vm67_vm3, %v63_v26, 0.0  ;;  %v148_v17 = vsel %vm128_vm1, %v20_v8, 0  ;;  %v21_v25 = vld [vmem:[%s2127_s0 + $0x38] sm:$0xff]  ;;  %v269_v26 = vsub.f32 %v1770_v0, %v268_v14 }
  0x7b   :  { %v176_v34 = vand.u32 4294901760, %v71_v27  ;;  %v170_v35 = vand.u32 4294901760, %v69_v28  ;;  %v349_v45 = vand.u32 4294901760, %v1721_v33  ;;  %v363_v59 = vand.u32 4294901760, %v1735_v44 }
  0x7c   :  { %v55_v36 = vpop.permute.xlu0 %54  ;;  %v1810_v31 = vand.u32 4294901760, %v148_v17 }
  0x7d   :  { %v1724_v38 = vsub.f32 %v71_v27, %v176_v34  ;;  %v1726_v39 = vsub.f32 %v69_v28, %v170_v35  ;;  %v66_v41 = vsel %vm61_vm2, 0.0, %v55_v36  ;;  %v1730_v42 = vpack.c.bf16 %v170_v35, %v167_v19 }
  0x7e   :  { %v72_v49 = vsel %vm67_vm3, %v66_v41, 0.0  ;;  %v1756_v57 = vpack.c.bf16 %v176_v34, %v173_v32  ;;  %v350_v60 = vsub.f32 %v1721_v33, %v349_v45  ;;  %v364_v9 = vsub.f32 %v1735_v44, %v363_v59 }
  0x7f   :  { %v356_v48 = vand.u32 4294901760, %v1726_v39  ;;  %1489 = vmatpush3.bf16.msra.mxu1 %v1730_v42  ;;  %1507 = vmatpush3.bf16.msra.mxu0 %v1730_v42  ;;  %v370_v52 = vand.u32 4294901760, %v1724_v38  ;;  %v164_v53 = vsel %vm162_vm4, %v72_v49, 0  ;;  %v278_v27 = vand.u32 4294901760, %v1790_v15 }
  0x80   :  { %1490 = vmatprep.subr.bf16.mxu1 %v1640_v2  ;;  %1508 = vmatprep.subr.bf16.mxu0 %v1640_v2  ;;  %v1754_v56 = vand.u32 4294901760, %v164_v53  ;;  %v351_v10 = vand.u32 4294901760, %v350_v60  ;;  %v365_v23 = vand.u32 4294901760, %v364_v9  ;;  %v1808_v28 = vsub.f32 %v145_v7, %v1792_v16 }
  0x81   :  { %v357_v55 = vsub.f32 %v1726_v39, %v356_v48  ;;  %v371_v3 = vsub.f32 %v1724_v38, %v370_v52  ;;  %v1512_v22 = vpack.c.bf16 %v356_v48, %v349_v45  ;;  %v1515_v34 = vpack.c.bf16 %v370_v52, %v363_v59  ;;  %v23_v52 = vld [vmem:[%s2127_s0 + $0x48] sm:$0xff] }
  0x82   :  { %v1776_v5 = vsub.f32 %v164_v53, %v1754_v56  ;;  %v260_v35 = vand.u32 4294901760, %v259_v12  ;;  %v279_v41 = vsub.f32 %v1790_v15, %v278_v27  ;;  %v1827_v43 = vsub.f32 %v148_v17, %v1810_v31  ;;  %v27_v12 = vld [vmem:[%s2128_s1 + $0x10] sm:$0xff]  ;;  %v29_v17 = vld [vmem:[%s2128_s1 + $0x20] sm:$0xff] }
  0x83   :  { %1492 = vmatpush3.bf16.msra.mxu1 %v1756_v57  ;;  %1510 = vmatpush3.bf16.msra.mxu0 %v1756_v57  ;;  %v358_v4 = vand.u32 4294901760, %v357_v55  ;;  %v372_v19 = vand.u32 4294901760, %v371_v3  ;;  %v288_v48 = vand.u32 4294901760, %v1808_v28  ;;  %v1847_v59 = vand.u32 4294901760, %v154_v50 }
  0x84   :  { %1237 = vmatprep.subr.mxu1 %v1643_v6  ;;  %1366 = vmatprep.subr.mxu0 %v1643_v6  ;;  %v377_v20 = vand.u32 4294901760, %v1776_v5  ;;  %v280_v53 = vand.u32 4294901760, %v279_v41  ;;  %v298_v54 = vand.u32 4294901760, %v1827_v43  ;;  %v157_v60 = vsel %vm128_vm1, %v23_v52, 0  ;;  %v34_v52 = vld [vmem:[%s2128_s1 + $0x48] sm:$0xff] }
  0x85   :  { %v1494_v21 = vpack.c.bf16 %v358_v4, %v351_v10  ;;  %v1497_v32 = vpack.c.bf16 %v372_v19, %v365_v23  ;;  %v289_v55 = vsub.f32 %v1808_v28, %v288_v48  ;;  %v1644_v3 = vmov 0   ;;  %v26_v4 = vld [vmem:[%s2128_s1 + $0x8] sm:$0xff]  ;;  %v28_v23 = vld [vmem:[%s2128_s1 + $0x18] sm:$0xff] }
  0x86   :  { %v378_v36 = vsub.f32 %v1776_v5, %v377_v20  ;;  %1638 = vset.pattern.permute.xlu1 %v1644_v3  ;;  %1639 = vset.pattern.permute.xlu0 %v1644_v3  ;;  %v1868_v9 = vsub.f32 %v154_v50, %v1847_v59  ;;  %v1870_v10 = vand.u32 4294901760, %v157_v60 }
  0x87   :  { %1238 = vmatpush3.msra.mxu1 %v1754_v56  ;;  %1367 = vmatpush3.msra.mxu0 %v1754_v56  ;;  %v290_v7 = vand.u32 4294901760, %v289_v55  ;;  %v1503_v55 = vpack.c.bf16 %v1724_v38, %v1735_v44 }
  0x88   :  { %1240 = vmatmul.mubr.f32.vlgmr.msra.gmra.mrb[0].mxu1 %v240_v63  ;;  %1493 = vmatprep.subr.bf16.mxu1 %v1640_v2  ;;  %v379_v45 = vand.u32 4294901760, %v378_v36  ;;  %v299_v63 = vsub.f32 %v1827_v43, %v298_v54  ;;  %v33_v36 = vld [vmem:[%s2128_s1 + $0x40] sm:$0xff] }
  0x89   :  { %1369 = vmatmul.mubr.f32.vlgmr.msra.gmra.mrb[0].mxu0 %v238_v37  ;;  %1511 = vmatprep.subr.bf16.mxu0 %v1640_v2  ;;  %v151_v37 = vsel %vm128_vm1, %v21_v25, 0  ;;  %v31_v25 = vld [vmem:[%s2128_s1 + $0x30] sm:$0xff] }
  0x8a   :  { %1495 = vmatpush3.bf16.msra.mxu1 %v1494_v21  ;;  %1513 = vmatpush3.bf16.msra.mxu0 %v1512_v22  ;;  %v1831_v49 = vand.u32 4294901760, %v151_v37  ;;  %v1886_v21 = vsub.f32 %v157_v60, %v1870_v10 }
  0x8b   :  { %1242 = vmatprep.mubr.msk.f32.mxu1 %vm1642_vm0, %v1643_v6  ;;  %1371 = vmatprep.mubr.msk.f32.mxu0 %vm1642_vm0, %v1643_v6 }
  0x8c   :  { %1243 = vmatmul.mubr.f32.gmra.mrb[2].mxu1 %v250_v11  ;;  %1496 = vmatprep.subr.bf16.mxu1 %v1640_v2  ;;  %v1845_v58 = vsub.f32 %v151_v37, %v1831_v49 }
  0x8d   :  { %1372 = vmatmul.mubr.f32.gmra.mrb[2].mxu0 %v248_v46  ;;  %1514 = vmatprep.subr.bf16.mxu0 %v1640_v2  ;;  %v270_v46 = vand.u32 4294901760, %v269_v26 }
  0x8e   :  { %1498 = vmatpush3.bf16.msra.mxu1 %v1497_v32  ;;  %1516 = vmatpush3.bf16.msra.mxu0 %v1515_v34  ;;  %v308_v8 = vand.u32 4294901760, %v1845_v58  ;;  %v328_v32 = vand.u32 4294901760, %v1886_v21 }
  0x8f   :  { %1245 = vmatprep.mubr.msk.f32.mxu1 %vm1642_vm0, %v1643_v6  ;;  %1374 = vmatprep.mubr.msk.f32.mxu0 %vm1642_vm0, %v1643_v6 }
  0x90   :  { %1246 = vmatmul.mubr.f32.gmra.mrb[4].mxu1 %v260_v35  ;;  %1280 = vmatprep.subr.mxu1 %v1643_v6  ;;  %v309_v19 = vsub.f32 %v1845_v58, %v308_v8  ;;  %v30_v35 = vld [vmem:[%s2128_s1 + $0x28] sm:$0xff]  ;;  %v329_v40 = vsub.f32 %v1886_v21, %v328_v32 }
  0x91   :  { %1375 = vmatmul.mubr.f32.gmra.mrb[4].mxu0 %v258_v62  ;;  %1409 = vmatprep.subr.mxu0 %v1643_v6  ;;  %v24_v62 = vld [vmem:[%s2127_s0 + $0x50] sm:$0x7f] }
  0x92   :  { %1281 = vmatpush3.msra.mxu1 %v379_v45  ;;  %1410 = vmatpush3.msra.mxu0 %v377_v20  ;;  %v160_v11 = vsel %vm128_vm1, %v24_v62, 0  ;;  %v318_v20 = vand.u32 4294901760, %v1868_v9  ;;  %v310_v26 = vand.u32 4294901760, %v309_v19  ;;  %v32_v45 = vld [vmem:[%s2128_s1 + $0x38] sm:$0xff] }
  0x93   :  { %1248 = vmatprep.mubr.msk.f32.mxu1 %vm1642_vm0, %v1643_v6  ;;  %1377 = vmatprep.mubr.msk.f32.mxu0 %vm1642_vm0, %v1643_v6  ;;  %v1888_v22 = vand.u32 4294901760, %v160_v11 }
  0x94   :  { %1249 = vmatmul.mubr.f32.gmra.mrb[6].mxu1 %v270_v46  ;;  %1499 = vmatprep.subr.bf16.mxu1 %v1640_v2  ;;  %v35_v46 = vld [vmem:[%s2128_s1 + $0x50] sm:$0x7f] }
  0x95   :  { %1378 = vmatmul.mubr.f32.gmra.mrb[6].mxu0 %v268_v14  ;;  %1251 = vmatprep.mubr.msk.f32.mxu1 %vm1642_vm0, %v1643_v6  ;;  %v300_v14 = vand.u32 4294901760, %v299_v63  ;;  %v1903_v34 = vsub.f32 %v160_v11, %v1888_v22 }
  0x96   :  { %1380 = vmatprep.mubr.msk.f32.mxu0 %vm1642_vm0, %v1643_v6  ;;  %1517 = vmatprep.subr.bf16.mxu0 %v1640_v2 }
  0x97   :  { %75 = vperm.xlu1 %1638, %v25_v61   ;;  %80 = vperm.xlu0 %1639, %v26_v4   ;;  %v338_v41 = vand.u32 4294901760, %v1903_v34 }
  0x98   :  { %1252 = vmatmul.mubr.f32.gmra.mrb[8].mxu1 %v280_v53 }
  0x99   :  { %1381 = vmatmul.mubr.f32.gmra.mrb[8].mxu0 %v278_v27  ;;  %1254 = vmatprep.mubr.msk.f32.mxu1 %vm1642_vm0, %v1643_v6  ;;  %v319_v27 = vsub.f32 %v1868_v9, %v318_v20  ;;  %v339_v50 = vsub.f32 %v1903_v34, %v338_v41 }
  0x9a   :  { %1383 = vmatprep.mubr.msk.f32.mxu0 %vm1642_vm0, %v1643_v6 }
  0x9b   :  { %85 = vperm.xlu1 %1638, %v27_v12   ;;  %95 = vperm.xlu0 %1639, %v29_v17   ;;  %v320_v37 = vand.u32 4294901760, %v319_v27  ;;  %v340_v53 = vand.u32 4294901760, %v339_v50 }
  0x9c   :  { %1255 = vmatmul.mubr.f32.gmra.mrb[10].mxu1 %v290_v7 }
  0x9d   :  { %1384 = vmatmul.mubr.f32.gmra.mrb[10].mxu0 %v288_v48  ;;  %1257 = vmatprep.mubr.msk.f32.mxu1 %vm1642_vm0, %v1643_v6  ;;  %v330_v48 = vand.u32 4294901760, %v329_v40 }
  0x9e   :  { %1386 = vmatprep.mubr.msk.f32.mxu0 %vm1642_vm0, %v1643_v6 }
  0x9f   :  { %90 = vperm.xlu1 %1638, %v28_v23   ;;  %105 = vperm.xlu0 %1639, %v31_v25  }
  0xa0   :  { %1258 = vmatmul.mubr.f32.gmra.mrb[12].mxu1 %v300_v14 }
  0xa1   :  { %1387 = vmatmul.mubr.f32.gmra.mrb[12].mxu0 %v298_v54  ;;  %1260 = vmatprep.mubr.msk.f32.mxu1 %vm1642_vm0, %v1643_v6  ;;  %v1500_v54 = vpack.c.bf16 %v1726_v39, %v1721_v33 }
  0xa2   :  { %1389 = vmatprep.mubr.msk.f32.mxu0 %vm1642_vm0, %v1643_v6 }
  0xa3   :  { %100 = vperm.xlu1 %1638, %v30_v35   ;;  %115 = vperm.xlu0 %1639, %v33_v36  }
  0xa4   :  { %1261 = vmatmul.mubr.f32.gmra.mrb[14].mxu1 %v310_v26 }
  0xa5   :  { %1390 = vmatmul.mubr.f32.gmra.mrb[14].mxu0 %v308_v8  ;;  %1263 = vmatprep.mubr.msk.f32.mxu1 %vm1642_vm0, %v1643_v6 }
  0xa6   :  { %1392 = vmatprep.mubr.msk.f32.mxu0 %vm1642_vm0, %v1643_v6 }
  0xa7   :  { %110 = vperm.xlu1 %1638, %v32_v45   ;;  %125 = vperm.xlu0 %1639, %v35_v46  }
  0xa8   :  { %1264 = vmatmul.mubr.f32.gmra.mrb[16].mxu1 %v320_v37 }
  0xa9   :  { %1393 = vmatmul.mubr.f32.gmra.mrb[16].mxu0 %v318_v20  ;;  %1266 = vmatprep.mubr.msk.f32.mxu1 %vm1642_vm0, %v1643_v6 }
  0xaa   :  { %1395 = vmatprep.mubr.msk.f32.mxu0 %vm1642_vm0, %v1643_v6 }
  0xab   :  { %120 = vperm.xlu1 %1638, %v34_v52  }
  0xac   :  { %1267 = vmatmul.mubr.f32.gmra.mrb[18].mxu1 %v330_v48 }
  0xad   :  { %1396 = vmatmul.mubr.f32.gmra.mrb[18].mxu0 %v328_v32  ;;  %1269 = vmatprep.mubr.msk.f32.mxu1 %vm1642_vm0, %v1643_v6 }
  0xae   :  { %1398 = vmatprep.mubr.msk.f32.mxu0 %vm1642_vm0, %v1643_v6 }
  0xb0   :  { %1270 = vmatmul.mubr.f32.gmra.mrb[20].mxu1 %v340_v53 }
  0xb1   :  { %1399 = vmatmul.mubr.f32.gmra.mrb[20].mxu0 %v338_v41  ;;  %1282 = vmatprep.mubr.msk.f32.mxu1 %vm1642_vm0, %v1643_v6 }
  0xb2   :  { %1411 = vmatprep.mubr.msk.f32.mxu0 %vm1642_vm0, %v1643_v6 }
  0xb4   :  { %1283 = vmatmul.mubr.f32.vlgmr.msra.gmra.mrb[0].mxu1 %v1694_v13 }
  0xb5   :  { %1501 = vmatpush3.bf16.msra.mxu1 %v1500_v54  ;;  %1412 = vmatmul.mubr.f32.vlgmr.msra.gmra.mrb[0].mxu0 %v1694_v13 }
  0xb6   :  { %1519 = vmatpush3.bf16.msra.mxu0 %v1730_v42  ;;  %1285 = vmatprep.mubr.msk.f32.mxu1 %vm1642_vm0, %v1643_v6 }
  0xb7   :  { %1502 = vmatprep.subr.bf16.mxu1 %v1640_v2  ;;  %1414 = vmatprep.mubr.msk.f32.mxu0 %vm1642_vm0, %v1643_v6 }
  0xb8   :  { %1520 = vmatprep.subr.bf16.mxu0 %v1640_v2  ;;  %1286 = vmatmul.mubr.f32.gmra.mrb[2].mxu1 %v1702_v18 }
  0xb9   :  { %1504 = vmatpush3.bf16.msra.mxu1 %v1503_v55  ;;  %1415 = vmatmul.mubr.f32.gmra.mrb[2].mxu0 %v1702_v18 }
  0xba   :  { %1522 = vmatpush3.bf16.msra.mxu0 %v1756_v57  ;;  %1288 = vmatprep.mubr.msk.f32.mxu1 %vm1642_vm0, %v1643_v6 }
  0xbb   :  { %1323 = vmatprep.subr.mxu1 %v1643_v6  ;;  %1417 = vmatprep.mubr.msk.f32.mxu0 %vm1642_vm0, %v1643_v6 }
  0xbc   :  { %1452 = vmatprep.subr.mxu0 %v1643_v6  ;;  %1289 = vmatmul.mubr.f32.gmra.mrb[4].mxu1 %v1716_v30 }
  0xbd   :  { %1324 = vmatpush3.msra.mxu1 %v1776_v5  ;;  %1418 = vmatmul.mubr.f32.gmra.mrb[4].mxu0 %v1716_v30 }
  0xbe   :  { %1453 = vmatpush3.msra.mxu0 %v1754_v56  ;;  %1291 = vmatprep.mubr.msk.f32.mxu1 %vm1642_vm0, %v1643_v6 }
  0xbf   :  { %1420 = vmatprep.mubr.msk.f32.mxu0 %vm1642_vm0, %v1643_v6 }
  0xc0   :  { %1292 = vmatmul.mubr.f32.gmra.mrb[6].mxu1 %v1747_v51 }
  0xc1   :  { %1421 = vmatmul.mubr.f32.gmra.mrb[6].mxu0 %v1747_v51  ;;  %1294 = vmatprep.mubr.msk.f32.mxu1 %vm1642_vm0, %v1643_v6 }
  0xc2   :  { %1423 = vmatprep.mubr.msk.f32.mxu0 %vm1642_vm0, %v1643_v6 }
  0xc4   :  { %1295 = vmatmul.mubr.f32.gmra.mrb[8].mxu1 %v1772_v1 }
  0xc5   :  { %1424 = vmatmul.mubr.f32.gmra.mrb[8].mxu0 %v1772_v1  ;;  %1297 = vmatprep.mubr.msk.f32.mxu1 %vm1642_vm0, %v1643_v6 }
  0xc6   :  { %1426 = vmatprep.mubr.msk.f32.mxu0 %vm1642_vm0, %v1643_v6 }
  0xc8   :  { %1298 = vmatmul.mubr.f32.gmra.mrb[10].mxu1 %v1792_v16 }
  0xc9   :  { %1427 = vmatmul.mubr.f32.gmra.mrb[10].mxu0 %v1792_v16  ;;  %1300 = vmatprep.mubr.msk.f32.mxu1 %vm1642_vm0, %v1643_v6 }
  0xca   :  { %1429 = vmatprep.mubr.msk.f32.mxu0 %vm1642_vm0, %v1643_v6 }
  0xcc   :  { %1301 = vmatmul.mubr.f32.gmra.mrb[12].mxu1 %v1810_v31 }
  0xcd   :  { %1430 = vmatmul.mubr.f32.gmra.mrb[12].mxu0 %v1810_v31  ;;  %1303 = vmatprep.mubr.msk.f32.mxu1 %vm1642_vm0, %v1643_v6 }
  0xce   :  { %1432 = vmatprep.mubr.msk.f32.mxu0 %vm1642_vm0, %v1643_v6 }
  0xd0   :  { %1304 = vmatmul.mubr.f32.gmra.mrb[14].mxu1 %v1831_v49 }
  0xd1   :  { %1433 = vmatmul.mubr.f32.gmra.mrb[14].mxu0 %v1831_v49  ;;  %1306 = vmatprep.mubr.msk.f32.mxu1 %vm1642_vm0, %v1643_v6 }
  0xd2   :  { %1435 = vmatprep.mubr.msk.f32.mxu0 %vm1642_vm0, %v1643_v6 }
  0xd4   :  { %1307 = vmatmul.mubr.f32.gmra.mrb[16].mxu1 %v1847_v59 }
  0xd5   :  { %1436 = vmatmul.mubr.f32.gmra.mrb[16].mxu0 %v1847_v59  ;;  %1309 = vmatprep.mubr.msk.f32.mxu1 %vm1642_vm0, %v1643_v6 }
  0xd6   :  { %1438 = vmatprep.mubr.msk.f32.mxu0 %vm1642_vm0, %v1643_v6 }
  0xd8   :  { %1310 = vmatmul.mubr.f32.gmra.mrb[18].mxu1 %v1870_v10 }
  0xd9   :  { %1439 = vmatmul.mubr.f32.gmra.mrb[18].mxu0 %v1870_v10  ;;  %1312 = vmatprep.mubr.msk.f32.mxu1 %vm1642_vm0, %v1643_v6 }
  0xda   :  { %1441 = vmatprep.mubr.msk.f32.mxu0 %vm1642_vm0, %v1643_v6 }
  0xdc   :  { %1313 = vmatmul.mubr.f32.gmra.mrb[20].mxu1 %v1888_v22 }
  0xdd   :  { %1442 = vmatmul.mubr.f32.gmra.mrb[20].mxu0 %v1888_v22  ;;  %1325 = vmatprep.mubr.msk.f32.mxu1 %vm1642_vm0, %v1643_v6 }
  0xde   :  { %1454 = vmatprep.mubr.msk.f32.mxu0 %vm1642_vm0, %v1643_v6 }
  0xe0   :  { %1326 = vmatmul.mubr.f32.vlgmr.msra.gmra.mrb[0].mxu1 %v1707_v24 }
  0xe1   :  { %1455 = vmatmul.mubr.f32.vlgmr.msra.gmra.mrb[0].mxu0 %v1694_v13  ;;  %1328 = vmatprep.mubr.msk.f32.mxu1 %vm1642_vm0, %v1643_v6 }
  0xe2   :  { %1457 = vmatprep.mubr.msk.f32.mxu0 %vm1642_vm0, %v1643_v6 }
  0xe4   :  { %1329 = vmatmul.mubr.f32.gmra.mrb[2].mxu1 %v1714_v29 }
  0xe5   :  { %1458 = vmatmul.mubr.f32.gmra.mrb[2].mxu0 %v1702_v18  ;;  %1331 = vmatprep.mubr.msk.f32.mxu1 %vm1642_vm0, %v1643_v6 }
  0xe6   :  { %1460 = vmatprep.mubr.msk.f32.mxu0 %vm1642_vm0, %v1643_v6 }
  0xe8   :  { %1332 = vmatmul.mubr.f32.gmra.mrb[4].mxu1 %v1740_v47 }
  0xe9   :  { %1461 = vmatmul.mubr.f32.gmra.mrb[4].mxu0 %v1716_v30  ;;  %1334 = vmatprep.mubr.msk.f32.mxu1 %vm1642_vm0, %v1643_v6 }
  0xea   :  { %1463 = vmatprep.mubr.msk.f32.mxu0 %vm1642_vm0, %v1643_v6 }
  0xec   :  { %1335 = vmatmul.mubr.f32.gmra.mrb[6].mxu1 %v1770_v0 }
  0xed   :  { %1464 = vmatmul.mubr.f32.gmra.mrb[6].mxu0 %v1747_v51  ;;  %1337 = vmatprep.mubr.msk.f32.mxu1 %vm1642_vm0, %v1643_v6 }
  0xee   :  { %1466 = vmatprep.mubr.msk.f32.mxu0 %vm1642_vm0, %v1643_v6 }
  0xf0   :  { %1338 = vmatmul.mubr.f32.gmra.mrb[8].mxu1 %v1790_v15 }
  0xf1   :  { %1467 = vmatmul.mubr.f32.gmra.mrb[8].mxu0 %v1772_v1  ;;  %1340 = vmatprep.mubr.msk.f32.mxu1 %vm1642_vm0, %v1643_v6 }
  0xf2   :  { %1469 = vmatprep.mubr.msk.f32.mxu0 %vm1642_vm0, %v1643_v6 }
  0xf4   :  { %1341 = vmatmul.mubr.f32.gmra.mrb[10].mxu1 %v1808_v28 }
  0xf5   :  { %1470 = vmatmul.mubr.f32.gmra.mrb[10].mxu0 %v1792_v16  ;;  %1343 = vmatprep.mubr.msk.f32.mxu1 %vm1642_vm0, %v1643_v6 }
  0xf6   :  { %1472 = vmatprep.mubr.msk.f32.mxu0 %vm1642_vm0, %v1643_v6 }
  0xf8   :  { %1344 = vmatmul.mubr.f32.gmra.mrb[12].mxu1 %v1827_v43 }
  0xf9   :  { %1473 = vmatmul.mubr.f32.gmra.mrb[12].mxu0 %v1810_v31  ;;  %1346 = vmatprep.mubr.msk.f32.mxu1 %vm1642_vm0, %v1643_v6 }
  0xfa   :  { %1475 = vmatprep.mubr.msk.f32.mxu0 %vm1642_vm0, %v1643_v6 }
  0xfc   :  { %1347 = vmatmul.mubr.f32.gmra.mrb[14].mxu1 %v1845_v58 }
  0xfd   :  { %1476 = vmatmul.mubr.f32.gmra.mrb[14].mxu0 %v1831_v49  ;;  %1349 = vmatprep.mubr.msk.f32.mxu1 %vm1642_vm0, %v1643_v6 }
  0xfe   :  { %1478 = vmatprep.mubr.msk.f32.mxu0 %vm1642_vm0, %v1643_v6 }
 0x100   :  { %1350 = vmatmul.mubr.f32.gmra.mrb[16].mxu1 %v1868_v9 }
 0x101   :  { %1479 = vmatmul.mubr.f32.gmra.mrb[16].mxu0 %v1847_v59  ;;  %1352 = vmatprep.mubr.msk.f32.mxu1 %vm1642_vm0, %v1643_v6 }
 0x102   :  { %1481 = vmatprep.mubr.msk.f32.mxu0 %vm1642_vm0, %v1643_v6 }
 0x104   :  { %1353 = vmatmul.mubr.f32.gmra.mrb[18].mxu1 %v1886_v21 }
 0x105   :  { %1482 = vmatmul.mubr.f32.gmra.mrb[18].mxu0 %v1870_v10  ;;  %1355 = vmatprep.mubr.msk.f32.mxu1 %vm1642_vm0, %v1643_v6 }
 0x106   :  { %1484 = vmatprep.mubr.msk.f32.mxu0 %vm1642_vm0, %v1643_v6 }
 0x108   :  { %1356 = vmatmul.mubr.f32.gmra.mrb[20].mxu1 %v1903_v34 }
 0x109   :  { %1485 = vmatmul.mubr.f32.gmra.mrb[20].mxu0 %v1888_v22 }
 0x116   :  { %v76_v2 = vpop.permute.xlu1 %75  ;;  %v81_v33 = vpop.permute.xlu0 %80 }
 0x11a   :  { %v86_v56 = vpop.permute.xlu1 %85  ;;  %v96_v8 = vpop.permute.xlu0 %95 }
 0x11e   :  { %v91_v58 = vpop.permute.xlu1 %90  ;;  %v106_v36 = vpop.permute.xlu0 %105 }
 0x122   :  { %v101_v21 = vpop.permute.xlu1 %100 }
 0x126   :  { %v111_v53 = vpop.permute.xlu1 %110 }
 0x1b3   :  { %v580_v13 = vpop.f32.mrb[0].mxu1 }
 0x1b4   :  { %v1523_v18 = vadd.f32 %v580_v13, %v76_v2  ;;  %v1030_v24 = vpop.f32.mrb[0].mxu0  ;;  %v1327_v29 = vpop.f32.mrb[1].mxu1 }
 0x1b5   :  { %v1456_v30 = vpop.f32.mrb[1].mxu0 }
 0x1b6   :  { %v1524_v38 = vadd.f32 %v1523_v18, %v1030_v24 }
 0x1b7   :  { %v587_v39 = vpop.f32.mrb[2].mxu1 }
 0x1b8   :  { %v1094_v42 = vmax.f32 %v1524_v38, -3.0  ;;  %v1525_v44 = vadd.f32 %v587_v39, %v81_v33  ;;  %v1036_v47 = vpop.f32.mrb[2].mxu0  ;;  %v1330_v51 = vpop.f32.mrb[3].mxu1 }
 0x1b9   :  { %v1459_v6 = vpop.f32.mrb[3].mxu0  ;;  %v116_v33 = vpop.permute.xlu0 %115 }
 0x1ba   :  { %v1105_v57 = vmin.f32 %v1094_v42, 0.928  ;;  %v1526_v0 = vadd.f32 %v1525_v44, %v1036_v47 }
 0x1bb   :  { %v594_v1 = vpop.f32.mrb[4].mxu1 }
 0x1bc   :  { %1117 = vst.msk [vmem:[%s2129_s3] sm:$0xff] %vm1116_vm5, %v1105_v57  ;;  %v1095_v5 = vmax.f32 %v1526_v0, -3.0  ;;  %v1527_v15 = vadd.f32 %v594_v1, %v86_v56  ;;  %v1042_v16 = vpop.f32.mrb[4].mxu0  ;;  %v1333_v28 = vpop.f32.mrb[5].mxu1 }
 0x1bd   :  { %v1462_v31 = vpop.f32.mrb[5].mxu0  ;;  %v121_v57 = vpop.permute.xlu1 %120 }
 0x1be   :  { %v1106_v43 = vmin.f32 %v1095_v5, 0.928  ;;  %v1528_v49 = vadd.f32 %v1527_v15, %v1042_v16 }
 0x1bf   :  { %v601_v59 = vpop.f32.mrb[6].mxu1 }
 0x1c0   :  { %1118 = vst.msk [vmem:[%s2129_s3 + $0x8] sm:$0xff] %vm1116_vm5, %v1106_v43  ;;  %v1096_v60 = vmax.f32 %v1528_v49, -3.0  ;;  %v1529_v61 = vadd.f32 %v601_v59, %v91_v58  ;;  %v1048_v62 = vpop.f32.mrb[6].mxu0  ;;  %v1336_v63 = vpop.f32.mrb[7].mxu1 }
 0x1c1   :  { %v1465_v3 = vpop.f32.mrb[7].mxu0  ;;  %v126_v49 = vpop.permute.xlu0 %125 }
 0x1c2   :  { %v1107_v4 = vmin.f32 %v1096_v60, 0.928  ;;  %v1530_v7 = vadd.f32 %v1529_v61, %v1048_v62 }
 0x1c3   :  { %v608_v9 = vpop.f32.mrb[8].mxu1 }
 0x1c4   :  { %1119 = vst.msk [vmem:[%s2129_s3 + $0x10] sm:$0xff] %vm1116_vm5, %v1107_v4  ;;  %v1097_v10 = vmax.f32 %v1530_v7, -3.0  ;;  %v1531_v11 = vadd.f32 %v608_v9, %v96_v8  ;;  %v1054_v12 = vpop.f32.mrb[8].mxu0  ;;  %v1339_v14 = vpop.f32.mrb[9].mxu1 }
 0x1c5   :  { %v1468_v17 = vpop.f32.mrb[9].mxu0 }
 0x1c6   :  { %v1108_v19 = vmin.f32 %v1097_v10, 0.928  ;;  %v1532_v20 = vadd.f32 %v1531_v11, %v1054_v12 }
 0x1c7   :  { %v615_v22 = vpop.f32.mrb[10].mxu1 }
 0x1c8   :  { %1120 = vst.msk [vmem:[%s2129_s3 + $0x18] sm:$0xff] %vm1116_vm5, %v1108_v19  ;;  %v1098_v23 = vmax.f32 %v1532_v20, -3.0  ;;  %v1533_v25 = vadd.f32 %v615_v22, %v101_v21  ;;  %v1060_v26 = vpop.f32.mrb[10].mxu0  ;;  %v1342_v27 = vpop.f32.mrb[11].mxu1 }
 0x1c9   :  { %v1471_v32 = vpop.f32.mrb[11].mxu0 }
 0x1ca   :  { %v1109_v34 = vmin.f32 %v1098_v23, 0.928  ;;  %v1534_v35 = vadd.f32 %v1533_v25, %v1060_v26 }
 0x1cb   :  { %v622_v37 = vpop.f32.mrb[12].mxu1 }
 0x1cc   :  { %1121 = vst.msk [vmem:[%s2129_s3 + $0x20] sm:$0xff] %vm1116_vm5, %v1109_v34  ;;  %v1099_v40 = vmax.f32 %v1534_v35, -3.0  ;;  %v1535_v41 = vadd.f32 %v622_v37, %v106_v36  ;;  %v1066_v45 = vpop.f32.mrb[12].mxu0  ;;  %v1345_v46 = vpop.f32.mrb[13].mxu1 }
 0x1cd   :  { %v1474_v48 = vpop.f32.mrb[13].mxu0 }
 0x1ce   :  { %v1110_v50 = vmin.f32 %v1099_v40, 0.928  ;;  %v1536_v52 = vadd.f32 %v1535_v41, %v1066_v45 }
 0x1cf   :  { %v629_v54 = vpop.f32.mrb[14].mxu1 }
 0x1d0   :  { %1122 = vst.msk [vmem:[%s2129_s3 + $0x28] sm:$0xff] %vm1116_vm5, %v1110_v50  ;;  %v1100_v55 = vmax.f32 %v1536_v52, -3.0  ;;  %v1537_v2 = vadd.f32 %v629_v54, %v111_v53  ;;  %v1072_v13 = vpop.f32.mrb[14].mxu0  ;;  %v1348_v18 = vpop.f32.mrb[15].mxu1 }
 0x1d1   :  { %v1477_v24 = vpop.f32.mrb[15].mxu0 }
 0x1d2   :  { %v1111_v29 = vmin.f32 %v1100_v55, 0.928  ;;  %v1538_v30 = vadd.f32 %v1537_v2, %v1072_v13 }
 0x1d3   :  { %v636_v38 = vpop.f32.mrb[16].mxu1 }
 0x1d4   :  { %1123 = vst.msk [vmem:[%s2129_s3 + $0x30] sm:$0xff] %vm1116_vm5, %v1111_v29  ;;  %v1101_v39 = vmax.f32 %v1538_v30, -3.0  ;;  %v1539_v42 = vadd.f32 %v636_v38, %v116_v33  ;;  %v1078_v44 = vpop.f32.mrb[16].mxu0  ;;  %v1351_v47 = vpop.f32.mrb[17].mxu1 }
 0x1d5   :  { %v1480_v51 = vpop.f32.mrb[17].mxu0 }
 0x1d6   :  { %v1112_v56 = vmin.f32 %v1101_v39, 0.928  ;;  %v1540_v6 = vadd.f32 %v1539_v42, %v1078_v44 }
 0x1d7   :  { %v643_v0 = vpop.f32.mrb[18].mxu1 }
 0x1d8   :  { %1124 = vst.msk [vmem:[%s2129_s3 + $0x38] sm:$0xff] %vm1116_vm5, %v1112_v56  ;;  %v1102_v1 = vmax.f32 %v1540_v6, -3.0  ;;  %v1541_v5 = vadd.f32 %v643_v0, %v121_v57  ;;  %v1084_v15 = vpop.f32.mrb[18].mxu0  ;;  %v1354_v16 = vpop.f32.mrb[19].mxu1 }
 0x1d9   :  { %v1483_v28 = vpop.f32.mrb[19].mxu0 }
 0x1da   :  { %v1113_v31 = vmin.f32 %v1102_v1, 0.928  ;;  %v1542_v43 = vadd.f32 %v1541_v5, %v1084_v15 }
 0x1db   :  { %v650_v58 = vpop.f32.mrb[20].mxu1 }
 0x1dc   :  { %1125 = vst.msk [vmem:[%s2129_s3 + $0x40] sm:$0xff] %vm1116_vm5, %v1113_v31  ;;  %v1103_v59 = vmax.f32 %v1542_v43, -3.0  ;;  %v1543_v60 = vadd.f32 %v650_v58, %v126_v49  ;;  %v1090_v61 = vpop.f32.mrb[20].mxu0  ;;  %v1357_v62 = vpop.f32.mrb[21].mxu1 }
 0x1dd   :  { %v1486_v63 = vpop.f32.mrb[21].mxu0 }
 0x1de   :  { %v1114_v3 = vmin.f32 %v1103_v59, 0.928  ;;  %v1544_v4 = vadd.f32 %v1543_v60, %v1090_v61 }
 0x1e0   :  { %1126 = vst.msk [vmem:[%s2129_s3 + $0x48] sm:$0xff] %vm1116_vm5, %v1114_v3  ;;  %v1104_v7 = vmax.f32 %v1544_v4, -3.0 }
 0x1e2   :  { %v1115_v8 = vmin.f32 %v1104_v7, 0.928 }
 0x1e4   :  { %1128 = vst.msk [vmem:[%s2129_s3 + $0x50] sm:$0x7f] %vm1127_vm6, %v1115_v8 }

</bundles_post_ra>
